<compile_context>
chip_gen: v7x
topology: tpu7x:2x2x1
jax: 0.10.0
libtpu: 0.0.40
codegen_flags: <defaults>
</compile_context>

<pallas_src>
import jax
import jax.numpy as jnp
from jax.experimental import pallas as pl
from jax.experimental.pallas import tpu as pltpu


def _lstm_disc_kernel(x_ref, h0_ref, c0_ref, whht_ref, wih_ref, b_ref,
                      scale_ref, off_ref, wm_ref, bm_ref, out_ref):
    """T LSTMCell steps + final Linear+Sigmoid for one batch block.

    x_ref:    (BB, T)    raw inputs for this batch block
    h0_ref:   (BB, H)    initial hidden state
    c0_ref:   (BB, H)    initial cell state
    whht_ref: (H, 4H)    W_hh^T, gate cols in (i, f, o, g) order, i/f/o * 0.5
    wih_ref:  (1, 4H)    W_ih^T (input size 1), same order / scaling
    b_ref:    (1, 4H)    b_ih + b_hh, same order / scaling
    scale_ref:(1, 4H)    post-tanh scale  (0.5 on i/f/o lanes, 1 on g lanes)
    off_ref:  (1, 4H)    post-tanh offset (0.5 on i/f/o lanes, 0 on g lanes)
    wm_ref:   (1, H)     mlp Linear weight row, pre-scaled by 0.5
    bm_ref:   (1, 1)     mlp Linear bias, pre-scaled by 0.5
    out_ref:  (BB, 1)
    """
    BB, H = h0_ref.shape
    T = x_ref.shape[1]

    # Loop-invariant operands, loaded once.
    whht = whht_ref[...]
    wih = wih_ref[...]
    bias = b_ref[...]
    a_scale = scale_ref[...]
    a_off = off_ref[...]

    h = h0_ref[...]          # (BB, H) carried in vregs
    c = c0_ref[...]

    # Fully unrolled recurrence: T is small & static, h/c stay register
    # resident, the LLO scheduler sees across iterations.
    for t in range(T):
        # Input path: independent of h, so it overlaps the previous step's
        # matmul / gate math (no long-lived slab across the loop).
        x_t = x_ref[:, t:t + 1]                                   # (BB, 1)
        xb_t = x_t * wih + bias                                   # (BB, 4H)

        gates = xb_t + jnp.dot(h, whht,
                               preferred_element_type=jnp.float32)  # (BB, 4H)

        # One full-width EUP tanh; i/f/o columns were pre-scaled by 0.5, so
        # sigmoid(z) = 0.5*tanh(0.5 z) + 0.5 is just an affine afterwards.
        act = jnp.tanh(gates) * a_scale + a_off                   # (i, f, o, g)

        # Gate extraction: static lane slices (cross-lane shifts go to the XLU
        # slot; explicit pltpu.roll alignment is a possible follow-up).
        i_g = act[:, 0 * H:1 * H]
        f_g = act[:, 1 * H:2 * H]
        o_g = act[:, 2 * H:3 * H]
        g_g = act[:, 3 * H:4 * H]

        c = f_g * c + i_g * g_g
        h = o_g * jnp.tanh(c)

    # mlp: Linear(H, 1) + Sigmoid as VPU multiply + lane reduce (no N=1 MXU
    # op).  wm/bm are pre-scaled by 0.5 so sigmoid = 0.5*tanh(.)+0.5 directly.
    logits = jnp.sum(h * wm_ref[...], axis=-1, keepdims=True) + bm_ref[...]
    out_ref[...] = 0.5 * jnp.tanh(logits) + 0.5


def prepare_params(params):
    """One-time weight prep (amortized across forwards, NOT per-call).

    Reorders PyTorch LSTMCell gate blocks (i, f, g, o) -> (i, f, o, g),
    transposes W_hh, pre-scales the sigmoid-gate columns (and the mlp head)
    by 0.5, and builds the post-tanh affine rows.
    """
    H = params["weight_hh"].shape[1]

    def reorder_ifgo_to_ifog(a, axis=0):
        i, f, g, o = jnp.split(a, 4, axis=axis)
        return jnp.concatenate([i, f, o, g], axis=axis)

    # 0.5 pre-scale on the sigmoid gates (i, f, o); 1.0 on g (plain tanh).
    col_scale = jnp.concatenate(
        [jnp.full((3 * H,), 0.5, jnp.float32),
         jnp.ones((H,), jnp.float32)])

    w_ih = reorder_ifgo_to_ifog(params["weight_ih"]) * col_scale[:, None]
    w_hh = reorder_ifgo_to_ifog(params["weight_hh"]) * col_scale[:, None]
    b = reorder_ifgo_to_ifog(params["bias_ih"] + params["bias_hh"]) * col_scale

    prep = {
        "whht": w_hh.T,                           # (H, 4H)
        "wih": w_ih.reshape(1, 4 * H),            # (1, 4H)
        "b": b.reshape(1, 4 * H),                 # (1, 4H)
        "act_scale": jnp.concatenate(
            [jnp.full((1, 3 * H), 0.5, jnp.float32),
             jnp.ones((1, H), jnp.float32)], axis=1),
        "act_off": jnp.concatenate(
            [jnp.full((1, 3 * H), 0.5, jnp.float32),
             jnp.zeros((1, H), jnp.float32)], axis=1),
        "wm": params["mlp_weight"].reshape(1, H) * 0.5,
        "bm": params["mlp_bias"].reshape(1, 1) * 0.5,
    }
    return jax.tree_util.tree_map(jax.device_put, prep)


def lstm_discriminator(x, h0, c0, prep):
    """Per-forward path: one gridded pallas_call, zero weight preprocessing.

    x:  (B, T) float32
    h0: (B, H) float32   (initial hidden state, matching torch.randn draw)
    c0: (B, H) float32   (initial cell state)
    prep: output of prepare_params(params)
    returns: (B, 1) float32 in (0, 1)
    """
    B, T = x.shape
    H = h0.shape[1]

    # Batch-block grid: fills MXU rows for large B and (marked "parallel")
    # shards across both TensorCores on v7x; capped to keep the unrolled
    # recurrence's live vregs well under 64.
    block_b = min(B, 64)
    assert B % block_b == 0, "batch must be a multiple of the batch block"
    nb = B // block_b

    weight_spec = lambda shape: pl.BlockSpec(shape, lambda i: (0, 0))

    return pl.pallas_call(
        _lstm_disc_kernel,
        out_shape=jax.ShapeDtypeStruct((B, 1), jnp.float32),
        grid=(nb,),
        in_specs=[
            pl.BlockSpec((block_b, T), lambda i: (i, 0)),   # x
            pl.BlockSpec((block_b, H), lambda i: (i, 0)),   # h0
            pl.BlockSpec((block_b, H), lambda i: (i, 0)),   # c0
            weight_spec((H, 4 * H)),                        # whht
            weight_spec((1, 4 * H)),                        # wih
            weight_spec((1, 4 * H)),                        # b
            weight_spec((1, 4 * H)),                        # act_scale
            weight_spec((1, 4 * H)),                        # act_off
            weight_spec((1, H)),                            # wm
            weight_spec((1, 1)),                            # bm
        ],
        out_specs=pl.BlockSpec((block_b, 1), lambda i: (i, 0)),
        compiler_params=pltpu.CompilerParams(
            dimension_semantics=("parallel",)),
    )(x, h0, c0, prep["whht"], prep["wih"], prep["b"],
      prep["act_scale"], prep["act_off"], prep["wm"], prep["bm"])


def _reference(x, h0, c0, params):
    """Pure-JAX reference mirroring nn.LSTMCell + Linear + Sigmoid exactly."""
    H = h0.shape[1]
    w_ih, w_hh = params["weight_ih"], params["weight_hh"]
    b = params["bias_ih"] + params["bias_hh"]
    h, c = h0, c0
    for t in range(x.shape[1]):
        x_t = x[:, t].reshape(-1, 1)
        gates = x_t @ w_ih.T + h @ w_hh.T + b
        i_g = jax.nn.sigmoid(gates[:, 0 * H:1 * H])
        f_g = jax.nn.sigmoid(gates[:, 1 * H:2 * H])
        g_g = jnp.tanh(gates[:, 2 * H:3 * H])
        o_g = jax.nn.sigmoid(gates[:, 3 * H:4 * H])
        c = f_g * c + i_g * g_g
        h = o_g * jnp.tanh(c)
    return jax.nn.sigmoid(h @ params["mlp_weight"].T + params["mlp_bias"])


def make_params(key, lstm_dim):
    """Deterministic synthetic parameters with PyTorch LSTMCell/Linear shapes."""
    ks = jax.random.split(key, 6)
    H = lstm_dim
    scale = 1.0 / jnp.sqrt(jnp.float32(H))
    return {
        "weight_ih": jax.random.uniform(ks[0], (4 * H, 1), jnp.float32, -scale, scale),
        "weight_hh": jax.random.uniform(ks[1], (4 * H, H), jnp.float32, -scale, scale),
        "bias_ih":   jax.random.uniform(ks[2], (4 * H,), jnp.float32, -scale, scale),
        "bias_hh":   jax.random.uniform(ks[3], (4 * H,), jnp.float32, -scale, scale),
        "mlp_weight": jax.random.uniform(ks[4], (1, H), jnp.float32, -scale, scale),
        "mlp_bias":   jax.random.uniform(ks[5], (1,), jnp.float32, -scale, scale),
    }


if __name__ == "__main__":
    B, T, H = 8, 8, 32  # batch, sequence length (x_dim), lstm hidden dim

    key = jax.random.PRNGKey(0)
    k_x, k_h, k_c, k_p = jax.random.split(key, 4)

    x = jax.random.normal(k_x, (B, T), jnp.float32)
    # The PyTorch module draws hx/cx from torch.randn each forward; here we use
    # deterministic normal draws as the initial states.
    h0 = jax.random.normal(k_h, (B, H), jnp.float32)
    c0 = jax.random.normal(k_c, (B, H), jnp.float32)
    params = make_params(k_p, H)

    # One-time weight prep (off the per-forward path), then a single jitted
    # forward call.
    prep = prepare_params(params)
    forward = jax.jit(lstm_discriminator)

    out = forward(x, h0, c0, prep)
    out = jax.block_until_ready(out)

    ref = _reference(x, h0, c0, params)
    assert out.shape == (B, 1)
    assert jnp.allclose(out, ref, atol=1e-4, rtol=1e-4), (out, ref)

    print("KERNEL_OK")
</pallas_src>

<mosaic_0001>
module attributes {stable_mosaic.version = 11 : i64} {
  func.func @_lstm_disc_kernel(%arg0: i32, %arg1: memref<8x8xf32, #tpu.memory_space<vmem>>, %arg2: memref<8x32xf32, #tpu.memory_space<vmem>>, %arg3: memref<8x32xf32, #tpu.memory_space<vmem>>, %arg4: memref<32x128xf32, #tpu.memory_space<vmem>>, %arg5: memref<1x128xf32, #tpu.memory_space<vmem>>, %arg6: memref<1x128xf32, #tpu.memory_space<vmem>>, %arg7: memref<1x128xf32, #tpu.memory_space<vmem>>, %arg8: memref<1x128xf32, #tpu.memory_space<vmem>>, %arg9: memref<1x32xf32, #tpu.memory_space<vmem>>, %arg10: memref<1x1xf32, #tpu.memory_space<vmem>>, %arg11: memref<8x1xf32, #tpu.memory_space<vmem>>) attributes {dimension_semantics = [#tpu.dimension_semantics<parallel>], iteration_bounds = array<i64: 1>, scalar_prefetch = 0 : i64, scratch_operands = 0 : i64, tpu.core_type = #tpu.core_type<tc>, window_params = [{transform_indices = @transform_0, window_bounds = array<i64: 8, 8>}, {transform_indices = @transform_1, window_bounds = array<i64: 8, 32>}, {transform_indices = @transform_2, window_bounds = array<i64: 8, 32>}, {pipeline_mode = #tpu.pipeline_mode<synchronous>, transform_indices = @transform_3, window_bounds = array<i64: 32, 128>}, {pipeline_mode = #tpu.pipeline_mode<synchronous>, transform_indices = @transform_4, window_bounds = array<i64: 1, 128>}, {pipeline_mode = #tpu.pipeline_mode<synchronous>, transform_indices = @transform_5, window_bounds = array<i64: 1, 128>}, {pipeline_mode = #tpu.pipeline_mode<synchronous>, transform_indices = @transform_6, window_bounds = array<i64: 1, 128>}, {pipeline_mode = #tpu.pipeline_mode<synchronous>, transform_indices = @transform_7, window_bounds = array<i64: 1, 128>}, {pipeline_mode = #tpu.pipeline_mode<synchronous>, transform_indices = @transform_8, window_bounds = array<i64: 1, 32>}, {pipeline_mode = #tpu.pipeline_mode<synchronous>, transform_indices = @transform_9, window_bounds = array<i64: 1, 1>}, {transform_indices = @transform_10, window_bounds = array<i64: 8, 1>}]} {
    %c0 = arith.constant 0 : index
    %c0_0 = arith.constant 0 : index
    %0 = vector.load %arg4[%c0, %c0_0] : memref<32x128xf32, #tpu.memory_space<vmem>>, vector<32x128xf32>
    %c0_1 = arith.constant 0 : index
    %c0_2 = arith.constant 0 : index
    %1 = vector.load %arg5[%c0_1, %c0_2] : memref<1x128xf32, #tpu.memory_space<vmem>>, vector<1x128xf32>
    %c0_3 = arith.constant 0 : index
    %c0_4 = arith.constant 0 : index
    %2 = vector.load %arg6[%c0_3, %c0_4] : memref<1x128xf32, #tpu.memory_space<vmem>>, vector<1x128xf32>
    %c0_5 = arith.constant 0 : index
    %c0_6 = arith.constant 0 : index
    %3 = vector.load %arg7[%c0_5, %c0_6] : memref<1x128xf32, #tpu.memory_space<vmem>>, vector<1x128xf32>
    %c0_7 = arith.constant 0 : index
    %c0_8 = arith.constant 0 : index
    %4 = vector.load %arg8[%c0_7, %c0_8] : memref<1x128xf32, #tpu.memory_space<vmem>>, vector<1x128xf32>
    %c0_9 = arith.constant 0 : index
    %c0_10 = arith.constant 0 : index
    %5 = vector.load %arg2[%c0_9, %c0_10] : memref<8x32xf32, #tpu.memory_space<vmem>>, vector<8x32xf32>
    %c0_11 = arith.constant 0 : index
    %c0_12 = arith.constant 0 : index
    %6 = vector.load %arg3[%c0_11, %c0_12] : memref<8x32xf32, #tpu.memory_space<vmem>>, vector<8x32xf32>
    %c0_13 = arith.constant 0 : index
    %c0_14 = arith.constant 0 : index
    %7 = vector.load %arg1[%c0_13, %c0_14] : memref<8x8xf32, #tpu.memory_space<vmem>>, vector<8x1xf32>
    %8 = vector.broadcast %7 : vector<8x1xf32> to vector<8x128xf32>
    %9 = vector.broadcast %1 : vector<1x128xf32> to vector<8x128xf32>
    %10 = arith.mulf %8, %9 : vector<8x128xf32>
    %11 = vector.broadcast %2 : vector<1x128xf32> to vector<8x128xf32>
    %12 = arith.addf %10, %11 : vector<8x128xf32>
    %cst = arith.constant dense<0.000000e+00> : vector<8x128xf32>
    %13 = tpu.matmul %5, %0, %cst {dimension_numbers = #tpu.dot_dimension_numbers<[1], [0], [0], [1], [0, 0, 1, 1], [], []>} : vector<8x32xf32>, vector<32x128xf32>, vector<8x128xf32> -> vector<8x128xf32>
    %14 = arith.addf %12, %13 : vector<8x128xf32>
    %15 = math.tanh %14 : vector<8x128xf32>
    %16 = vector.broadcast %3 : vector<1x128xf32> to vector<8x128xf32>
    %17 = arith.mulf %15, %16 : vector<8x128xf32>
    %18 = vector.broadcast %4 : vector<1x128xf32> to vector<8x128xf32>
    %19 = arith.addf %17, %18 : vector<8x128xf32>
    %20 = vector.extract_strided_slice %19 {offsets = [0, 0], sizes = [8, 32], strides = [1, 1]} : vector<8x128xf32> to vector<8x32xf32>
    %21 = vector.extract_strided_slice %19 {offsets = [0, 32], sizes = [8, 32], strides = [1, 1]} : vector<8x128xf32> to vector<8x32xf32>
    %22 = vector.extract_strided_slice %19 {offsets = [0, 64], sizes = [8, 32], strides = [1, 1]} : vector<8x128xf32> to vector<8x32xf32>
    %23 = vector.extract_strided_slice %19 {offsets = [0, 96], sizes = [8, 32], strides = [1, 1]} : vector<8x128xf32> to vector<8x32xf32>
    %24 = arith.mulf %21, %6 : vector<8x32xf32>
    %25 = arith.mulf %20, %23 : vector<8x32xf32>
    %26 = arith.addf %24, %25 : vector<8x32xf32>
    %27 = math.tanh %26 : vector<8x32xf32>
    %28 = arith.mulf %22, %27 : vector<8x32xf32>
    %c0_15 = arith.constant 0 : index
    %c1 = arith.constant 1 : index
    %29 = vector.load %arg1[%c0_15, %c1] : memref<8x8xf32, #tpu.memory_space<vmem>>, vector<8x1xf32>
    %30 = vector.broadcast %29 : vector<8x1xf32> to vector<8x128xf32>
    %31 = vector.broadcast %1 : vector<1x128xf32> to vector<8x128xf32>
    %32 = arith.mulf %30, %31 : vector<8x128xf32>
    %33 = vector.broadcast %2 : vector<1x128xf32> to vector<8x128xf32>
    %34 = arith.addf %32, %33 : vector<8x128xf32>
    %cst_16 = arith.constant dense<0.000000e+00> : vector<8x128xf32>
    %35 = tpu.matmul %28, %0, %cst_16 {dimension_numbers = #tpu.dot_dimension_numbers<[1], [0], [0], [1], [0, 0, 1, 1], [], []>} : vector<8x32xf32>, vector<32x128xf32>, vector<8x128xf32> -> vector<8x128xf32>
    %36 = arith.addf %34, %35 : vector<8x128xf32>
    %37 = math.tanh %36 : vector<8x128xf32>
    %38 = vector.broadcast %3 : vector<1x128xf32> to vector<8x128xf32>
    %39 = arith.mulf %37, %38 : vector<8x128xf32>
    %40 = vector.broadcast %4 : vector<1x128xf32> to vector<8x128xf32>
    %41 = arith.addf %39, %40 : vector<8x128xf32>
    %42 = vector.extract_strided_slice %41 {offsets = [0, 0], sizes = [8, 32], strides = [1, 1]} : vector<8x128xf32> to vector<8x32xf32>
    %43 = vector.extract_strided_slice %41 {offsets = [0, 32], sizes = [8, 32], strides = [1, 1]} : vector<8x128xf32> to vector<8x32xf32>
    %44 = vector.extract_strided_slice %41 {offsets = [0, 64], sizes = [8, 32], strides = [1, 1]} : vector<8x128xf32> to vector<8x32xf32>
    %45 = vector.extract_strided_slice %41 {offsets = [0, 96], sizes = [8, 32], strides = [1, 1]} : vector<8x128xf32> to vector<8x32xf32>
    %46 = arith.mulf %43, %26 : vector<8x32xf32>
    %47 = arith.mulf %42, %45 : vector<8x32xf32>
    %48 = arith.addf %46, %47 : vector<8x32xf32>
    %49 = math.tanh %48 : vector<8x32xf32>
    %50 = arith.mulf %44, %49 : vector<8x32xf32>
    %c0_17 = arith.constant 0 : index
    %c2 = arith.constant 2 : index
    %51 = vector.load %arg1[%c0_17, %c2] : memref<8x8xf32, #tpu.memory_space<vmem>>, vector<8x1xf32>
    %52 = vector.broadcast %51 : vector<8x1xf32> to vector<8x128xf32>
    %53 = vector.broadcast %1 : vector<1x128xf32> to vector<8x128xf32>
    %54 = arith.mulf %52, %53 : vector<8x128xf32>
    %55 = vector.broadcast %2 : vector<1x128xf32> to vector<8x128xf32>
    %56 = arith.addf %54, %55 : vector<8x128xf32>
    %cst_18 = arith.constant dense<0.000000e+00> : vector<8x128xf32>
    %57 = tpu.matmul %50, %0, %cst_18 {dimension_numbers = #tpu.dot_dimension_numbers<[1], [0], [0], [1], [0, 0, 1, 1], [], []>} : vector<8x32xf32>, vector<32x128xf32>, vector<8x128xf32> -> vector<8x128xf32>
    %58 = arith.addf %56, %57 : vector<8x128xf32>
    %59 = math.tanh %58 : vector<8x128xf32>
    %60 = vector.broadcast %3 : vector<1x128xf32> to vector<8x128xf32>
    %61 = arith.mulf %59, %60 : vector<8x128xf32>
    %62 = vector.broadcast %4 : vector<1x128xf32> to vector<8x128xf32>
    %63 = arith.addf %61, %62 : vector<8x128xf32>
    %64 = vector.extract_strided_slice %63 {offsets = [0, 0], sizes = [8, 32], strides = [1, 1]} : vector<8x128xf32> to vector<8x32xf32>
    %65 = vector.extract_strided_slice %63 {offsets = [0, 32], sizes = [8, 32], strides = [1, 1]} : vector<8x128xf32> to vector<8x32xf32>
    %66 = vector.extract_strided_slice %63 {offsets = [0, 64], sizes = [8, 32], strides = [1, 1]} : vector<8x128xf32> to vector<8x32xf32>
    %67 = vector.extract_strided_slice %63 {offsets = [0, 96], sizes = [8, 32], strides = [1, 1]} : vector<8x128xf32> to vector<8x32xf32>
    %68 = arith.mulf %65, %48 : vector<8x32xf32>
    %69 = arith.mulf %64, %67 : vector<8x32xf32>
    %70 = arith.addf %68, %69 : vector<8x32xf32>
    %71 = math.tanh %70 : vector<8x32xf32>
    %72 = arith.mulf %66, %71 : vector<8x32xf32>
    %c0_19 = arith.constant 0 : index
    %c3 = arith.constant 3 : index
    %73 = vector.load %arg1[%c0_19, %c3] : memref<8x8xf32, #tpu.memory_space<vmem>>, vector<8x1xf32>
    %74 = vector.broadcast %73 : vector<8x1xf32> to vector<8x128xf32>
    %75 = vector.broadcast %1 : vector<1x128xf32> to vector<8x128xf32>
    %76 = arith.mulf %74, %75 : vector<8x128xf32>
    %77 = vector.broadcast %2 : vector<1x128xf32> to vector<8x128xf32>
    %78 = arith.addf %76, %77 : vector<8x128xf32>
    %cst_20 = arith.constant dense<0.000000e+00> : vector<8x128xf32>
    %79 = tpu.matmul %72, %0, %cst_20 {dimension_numbers = #tpu.dot_dimension_numbers<[1], [0], [0], [1], [0, 0, 1, 1], [], []>} : vector<8x32xf32>, vector<32x128xf32>, vector<8x128xf32> -> vector<8x128xf32>
    %80 = arith.addf %78, %79 : vector<8x128xf32>
    %81 = math.tanh %80 : vector<8x128xf32>
    %82 = vector.broadcast %3 : vector<1x128xf32> to vector<8x128xf32>
    %83 = arith.mulf %81, %82 : vector<8x128xf32>
    %84 = vector.broadcast %4 : vector<1x128xf32> to vector<8x128xf32>
    %85 = arith.addf %83, %84 : vector<8x128xf32>
    %86 = vector.extract_strided_slice %85 {offsets = [0, 0], sizes = [8, 32], strides = [1, 1]} : vector<8x128xf32> to vector<8x32xf32>
    %87 = vector.extract_strided_slice %85 {offsets = [0, 32], sizes = [8, 32], strides = [1, 1]} : vector<8x128xf32> to vector<8x32xf32>
    %88 = vector.extract_strided_slice %85 {offsets = [0, 64], sizes = [8, 32], strides = [1, 1]} : vector<8x128xf32> to vector<8x32xf32>
    %89 = vector.extract_strided_slice %85 {offsets = [0, 96], sizes = [8, 32], strides = [1, 1]} : vector<8x128xf32> to vector<8x32xf32>
    %90 = arith.mulf %87, %70 : vector<8x32xf32>
    %91 = arith.mulf %86, %89 : vector<8x32xf32>
    %92 = arith.addf %90, %91 : vector<8x32xf32>
    %93 = math.tanh %92 : vector<8x32xf32>
    %94 = arith.mulf %88, %93 : vector<8x32xf32>
    %c0_21 = arith.constant 0 : index
    %c4 = arith.constant 4 : index
    %95 = vector.load %arg1[%c0_21, %c4] : memref<8x8xf32, #tpu.memory_space<vmem>>, vector<8x1xf32>
    %96 = vector.broadcast %95 : vector<8x1xf32> to vector<8x128xf32>
    %97 = vector.broadcast %1 : vector<1x128xf32> to vector<8x128xf32>
    %98 = arith.mulf %96, %97 : vector<8x128xf32>
    %99 = vector.broadcast %2 : vector<1x128xf32> to vector<8x128xf32>
    %100 = arith.addf %98, %99 : vector<8x128xf32>
    %cst_22 = arith.constant dense<0.000000e+00> : vector<8x128xf32>
    %101 = tpu.matmul %94, %0, %cst_22 {dimension_numbers = #tpu.dot_dimension_numbers<[1], [0], [0], [1], [0, 0, 1, 1], [], []>} : vector<8x32xf32>, vector<32x128xf32>, vector<8x128xf32> -> vector<8x128xf32>
    %102 = arith.addf %100, %101 : vector<8x128xf32>
    %103 = math.tanh %102 : vector<8x128xf32>
    %104 = vector.broadcast %3 : vector<1x128xf32> to vector<8x128xf32>
    %105 = arith.mulf %103, %104 : vector<8x128xf32>
    %106 = vector.broadcast %4 : vector<1x128xf32> to vector<8x128xf32>
    %107 = arith.addf %105, %106 : vector<8x128xf32>
    %108 = vector.extract_strided_slice %107 {offsets = [0, 0], sizes = [8, 32], strides = [1, 1]} : vector<8x128xf32> to vector<8x32xf32>
    %109 = vector.extract_strided_slice %107 {offsets = [0, 32], sizes = [8, 32], strides = [1, 1]} : vector<8x128xf32> to vector<8x32xf32>
    %110 = vector.extract_strided_slice %107 {offsets = [0, 64], sizes = [8, 32], strides = [1, 1]} : vector<8x128xf32> to vector<8x32xf32>
    %111 = vector.extract_strided_slice %107 {offsets = [0, 96], sizes = [8, 32], strides = [1, 1]} : vector<8x128xf32> to vector<8x32xf32>
    %112 = arith.mulf %109, %92 : vector<8x32xf32>
    %113 = arith.mulf %108, %111 : vector<8x32xf32>
    %114 = arith.addf %112, %113 : vector<8x32xf32>
    %115 = math.tanh %114 : vector<8x32xf32>
    %116 = arith.mulf %110, %115 : vector<8x32xf32>
    %c0_23 = arith.constant 0 : index
    %c5 = arith.constant 5 : index
    %117 = vector.load %arg1[%c0_23, %c5] : memref<8x8xf32, #tpu.memory_space<vmem>>, vector<8x1xf32>
    %118 = vector.broadcast %117 : vector<8x1xf32> to vector<8x128xf32>
    %119 = vector.broadcast %1 : vector<1x128xf32> to vector<8x128xf32>
    %120 = arith.mulf %118, %119 : vector<8x128xf32>
    %121 = vector.broadcast %2 : vector<1x128xf32> to vector<8x128xf32>
    %122 = arith.addf %120, %121 : vector<8x128xf32>
    %cst_24 = arith.constant dense<0.000000e+00> : vector<8x128xf32>
    %123 = tpu.matmul %116, %0, %cst_24 {dimension_numbers = #tpu.dot_dimension_numbers<[1], [0], [0], [1], [0, 0, 1, 1], [], []>} : vector<8x32xf32>, vector<32x128xf32>, vector<8x128xf32> -> vector<8x128xf32>
    %124 = arith.addf %122, %123 : vector<8x128xf32>
    %125 = math.tanh %124 : vector<8x128xf32>
    %126 = vector.broadcast %3 : vector<1x128xf32> to vector<8x128xf32>
    %127 = arith.mulf %125, %126 : vector<8x128xf32>
    %128 = vector.broadcast %4 : vector<1x128xf32> to vector<8x128xf32>
    %129 = arith.addf %127, %128 : vector<8x128xf32>
    %130 = vector.extract_strided_slice %129 {offsets = [0, 0], sizes = [8, 32], strides = [1, 1]} : vector<8x128xf32> to vector<8x32xf32>
    %131 = vector.extract_strided_slice %129 {offsets = [0, 32], sizes = [8, 32], strides = [1, 1]} : vector<8x128xf32> to vector<8x32xf32>
    %132 = vector.extract_strided_slice %129 {offsets = [0, 64], sizes = [8, 32], strides = [1, 1]} : vector<8x128xf32> to vector<8x32xf32>
    %133 = vector.extract_strided_slice %129 {offsets = [0, 96], sizes = [8, 32], strides = [1, 1]} : vector<8x128xf32> to vector<8x32xf32>
    %134 = arith.mulf %131, %114 : vector<8x32xf32>
    %135 = arith.mulf %130, %133 : vector<8x32xf32>
    %136 = arith.addf %134, %135 : vector<8x32xf32>
    %137 = math.tanh %136 : vector<8x32xf32>
    %138 = arith.mulf %132, %137 : vector<8x32xf32>
    %c0_25 = arith.constant 0 : index
    %c6 = arith.constant 6 : index
    %139 = vector.load %arg1[%c0_25, %c6] : memref<8x8xf32, #tpu.memory_space<vmem>>, vector<8x1xf32>
    %140 = vector.broadcast %139 : vector<8x1xf32> to vector<8x128xf32>
    %141 = vector.broadcast %1 : vector<1x128xf32> to vector<8x128xf32>
    %142 = arith.mulf %140, %141 : vector<8x128xf32>
    %143 = vector.broadcast %2 : vector<1x128xf32> to vector<8x128xf32>
    %144 = arith.addf %142, %143 : vector<8x128xf32>
    %cst_26 = arith.constant dense<0.000000e+00> : vector<8x128xf32>
    %145 = tpu.matmul %138, %0, %cst_26 {dimension_numbers = #tpu.dot_dimension_numbers<[1], [0], [0], [1], [0, 0, 1, 1], [], []>} : vector<8x32xf32>, vector<32x128xf32>, vector<8x128xf32> -> vector<8x128xf32>
    %146 = arith.addf %144, %145 : vector<8x128xf32>
    %147 = math.tanh %146 : vector<8x128xf32>
    %148 = vector.broadcast %3 : vector<1x128xf32> to vector<8x128xf32>
    %149 = arith.mulf %147, %148 : vector<8x128xf32>
    %150 = vector.broadcast %4 : vector<1x128xf32> to vector<8x128xf32>
    %151 = arith.addf %149, %150 : vector<8x128xf32>
    %152 = vector.extract_strided_slice %151 {offsets = [0, 0], sizes = [8, 32], strides = [1, 1]} : vector<8x128xf32> to vector<8x32xf32>
    %153 = vector.extract_strided_slice %151 {offsets = [0, 32], sizes = [8, 32], strides = [1, 1]} : vector<8x128xf32> to vector<8x32xf32>
    %154 = vector.extract_strided_slice %151 {offsets = [0, 64], sizes = [8, 32], strides = [1, 1]} : vector<8x128xf32> to vector<8x32xf32>
    %155 = vector.extract_strided_slice %151 {offsets = [0, 96], sizes = [8, 32], strides = [1, 1]} : vector<8x128xf32> to vector<8x32xf32>
    %156 = arith.mulf %153, %136 : vector<8x32xf32>
    %157 = arith.mulf %152, %155 : vector<8x32xf32>
    %158 = arith.addf %156, %157 : vector<8x32xf32>
    %159 = math.tanh %158 : vector<8x32xf32>
    %160 = arith.mulf %154, %159 : vector<8x32xf32>
    %c0_27 = arith.constant 0 : index
    %c7 = arith.constant 7 : index
    %161 = vector.load %arg1[%c0_27, %c7] : memref<8x8xf32, #tpu.memory_space<vmem>>, vector<8x1xf32>
    %162 = vector.broadcast %161 : vector<8x1xf32> to vector<8x128xf32>
    %163 = vector.broadcast %1 : vector<1x128xf32> to vector<8x128xf32>
    %164 = arith.mulf %162, %163 : vector<8x128xf32>
    %165 = vector.broadcast %2 : vector<1x128xf32> to vector<8x128xf32>
    %166 = arith.addf %164, %165 : vector<8x128xf32>
    %cst_28 = arith.constant dense<0.000000e+00> : vector<8x128xf32>
    %167 = tpu.matmul %160, %0, %cst_28 {dimension_numbers = #tpu.dot_dimension_numbers<[1], [0], [0], [1], [0, 0, 1, 1], [], []>} : vector<8x32xf32>, vector<32x128xf32>, vector<8x128xf32> -> vector<8x128xf32>
    %168 = arith.addf %166, %167 : vector<8x128xf32>
    %169 = math.tanh %168 : vector<8x128xf32>
    %170 = vector.broadcast %3 : vector<1x128xf32> to vector<8x128xf32>
    %171 = arith.mulf %169, %170 : vector<8x128xf32>
    %172 = vector.broadcast %4 : vector<1x128xf32> to vector<8x128xf32>
    %173 = arith.addf %171, %172 : vector<8x128xf32>
    %174 = vector.extract_strided_slice %173 {offsets = [0, 0], sizes = [8, 32], strides = [1, 1]} : vector<8x128xf32> to vector<8x32xf32>
    %175 = vector.extract_strided_slice %173 {offsets = [0, 32], sizes = [8, 32], strides = [1, 1]} : vector<8x128xf32> to vector<8x32xf32>
    %176 = vector.extract_strided_slice %173 {offsets = [0, 64], sizes = [8, 32], strides = [1, 1]} : vector<8x128xf32> to vector<8x32xf32>
    %177 = vector.extract_strided_slice %173 {offsets = [0, 96], sizes = [8, 32], strides = [1, 1]} : vector<8x128xf32> to vector<8x32xf32>
    %178 = arith.mulf %175, %158 : vector<8x32xf32>
    %179 = arith.mulf %174, %177 : vector<8x32xf32>
    %180 = arith.addf %178, %179 : vector<8x32xf32>
    %181 = math.tanh %180 : vector<8x32xf32>
    %182 = arith.mulf %176, %181 : vector<8x32xf32>
    %c0_29 = arith.constant 0 : index
    %c0_30 = arith.constant 0 : index
    %183 = vector.load %arg9[%c0_29, %c0_30] : memref<1x32xf32, #tpu.memory_space<vmem>>, vector<1x32xf32>
    %184 = vector.broadcast %183 : vector<1x32xf32> to vector<8x32xf32>
    %185 = arith.mulf %182, %184 : vector<8x32xf32>
    %cst_31 = arith.constant dense<0.000000e+00> : vector<8xf32>
    %186 = vector.multi_reduction <add>, %185, %cst_31 [1] : vector<8x32xf32> to vector<8xf32>
    %187 = vector.shape_cast %186 : vector<8xf32> to vector<8x1xf32>
    %c0_32 = arith.constant 0 : index
    %c0_33 = arith.constant 0 : index
    %188 = vector.load %arg10[%c0_32, %c0_33] : memref<1x1xf32, #tpu.memory_space<vmem>>, vector<1x1xf32>
    %189 = vector.broadcast %188 : vector<1x1xf32> to vector<8x1xf32>
    %190 = arith.addf %187, %189 : vector<8x1xf32>
    %191 = math.tanh %190 : vector<8x1xf32>
    %cst_34 = arith.constant 5.000000e-01 : f32
    %192 = vector.broadcast %cst_34 : f32 to vector<8x1xf32>
    %193 = arith.mulf %192, %191 : vector<8x1xf32>
    %cst_35 = arith.constant 5.000000e-01 : f32
    %194 = vector.broadcast %cst_35 : f32 to vector<8x1xf32>
    %195 = arith.addf %193, %194 : vector<8x1xf32>
    %c0_36 = arith.constant 0 : index
    %c0_37 = arith.constant 0 : index
    %196 = vector.load %arg11[%c0_36, %c0_37] : memref<8x1xf32, #tpu.memory_space<vmem>>, vector<8x1xf32>
    tpu.vector_store %arg11[%c0_36, %c0_37], %195 {strides = array<i32>} : memref<8x1xf32, #tpu.memory_space<vmem>>, vector<8x1xf32>,
    return
  }
  func.func @transform_0(%arg0: i32) -> (i32, i32) {
    %c0_i32 = arith.constant 0 : i32
    %c0_i32_0 = arith.constant 0 : i32
    return %arg0, %c0_i32 : i32, i32
  }
  func.func @transform_1(%arg0: i32) -> (i32, i32) {
    %c0_i32 = arith.constant 0 : i32
    %c0_i32_0 = arith.constant 0 : i32
    return %arg0, %c0_i32 : i32, i32
  }
  func.func @transform_2(%arg0: i32) -> (i32, i32) {
    %c0_i32 = arith.constant 0 : i32
    %c0_i32_0 = arith.constant 0 : i32
    return %arg0, %c0_i32 : i32, i32
  }
  func.func @transform_3(%arg0: i32) -> (i32, i32) {
    %c0_i32 = arith.constant 0 : i32
    %c0_i32_0 = arith.constant 0 : i32
    %c0_i32_1 = arith.constant 0 : i32
    return %c0_i32, %c0_i32_0 : i32, i32
  }
  func.func @transform_4(%arg0: i32) -> (i32, i32) {
    %c0_i32 = arith.constant 0 : i32
    %c0_i32_0 = arith.constant 0 : i32
    %c0_i32_1 = arith.constant 0 : i32
    return %c0_i32, %c0_i32_0 : i32, i32
  }
  func.func @transform_5(%arg0: i32) -> (i32, i32) {
    %c0_i32 = arith.constant 0 : i32
    %c0_i32_0 = arith.constant 0 : i32
    %c0_i32_1 = arith.constant 0 : i32
    return %c0_i32, %c0_i32_0 : i32, i32
  }
  func.func @transform_6(%arg0: i32) -> (i32, i32) {
    %c0_i32 = arith.constant 0 : i32
    %c0_i32_0 = arith.constant 0 : i32
    %c0_i32_1 = arith.constant 0 : i32
    return %c0_i32, %c0_i32_0 : i32, i32
  }
  func.func @transform_7(%arg0: i32) -> (i32, i32) {
    %c0_i32 = arith.constant 0 : i32
    %c0_i32_0 = arith.constant 0 : i32
    %c0_i32_1 = arith.constant 0 : i32
    return %c0_i32, %c0_i32_0 : i32, i32
  }
  func.func @transform_8(%arg0: i32) -> (i32, i32) {
    %c0_i32 = arith.constant 0 : i32
    %c0_i32_0 = arith.constant 0 : i32
    %c0_i32_1 = arith.constant 0 : i32
    return %c0_i32, %c0_i32_0 : i32, i32
  }
  func.func @transform_9(%arg0: i32) -> (i32, i32) {
    %c0_i32 = arith.constant 0 : i32
    %c0_i32_0 = arith.constant 0 : i32
    %c0_i32_1 = arith.constant 0 : i32
    return %c0_i32, %c0_i32_0 : i32, i32
  }
  func.func @transform_10(%arg0: i32) -> (i32, i32) {
    %c0_i32 = arith.constant 0 : i32
    %c0_i32_0 = arith.constant 0 : i32
    return %arg0, %c0_i32 : i32, i32
  }
}

</mosaic_0001>

<bundles_post_ra>
// kernel: lstm_discriminator.1
= control target key start
LH: loop header
LB: loop body
LE: loop exit
PB: predicated region body
PF: predicated region fallthrough
CT: control target
= control target key end

     0   :  { %s1563_s0 = inlined_call_operand.hbm [shape: f32[8,8], index: 0, kind: input, shape index: {}]   ;;  %s1564_s1 = inlined_call_operand.hbm [shape: f32[8,32], index: 1, kind: input, shape index: {}]   ;;  %s1565_s2 = inlined_call_operand.vmem [shape: f32[8,32], index: 2, kind: input, shape index: {}]   ;;  %s1566_s3 = inlined_call_operand.hbm [shape: f32[32,128], index: 3, kind: input, shape index: {}]   ;;  %s1567_s4 = inlined_call_operand.vmem [shape: f32[1,128], index: 4, kind: input, shape index: {}]   ;;  %s1568_s5 = inlined_call_operand.vmem [shape: f32[1,128], index: 5, kind: input, shape index: {}]   ;;  %s1569_s6 = inlined_call_operand.vmem [shape: f32[1,128], index: 6, kind: input, shape index: {}]   ;;  %s1570_s7 = inlined_call_operand.vmem [shape: f32[1,128], index: 7, kind: input, shape index: {}]   ;;  %s1571_s8 = inlined_call_operand.vmem [shape: f32[1,32], index: 8, kind: input, shape index: {}]   ;;  %s1572_s9 = inlined_call_operand.<no memory space> [shape: f32[1,1], index: 9, kind: input, shape index: {}]   ;;  %s1573_s10 = inlined_call_operand.vmem [shape: f32[8,1], index: 10, kind: output, shape index: {}]  }
   0x1   :  { %v15_v0 = vstv %s1572_s9 }
   0x2   :  { %16 = vst [vmem:[#allocation2] sm:$0x1] %v15_v0 }
   0x3   :  { %17 = vsyncpa [#allocation4], 0 }
   0x4   :  { %18 = vsyncpa [#allocation6], 0  ;;  %s1285_s15 = smov [#allocation5]   ;;  %s1286_s17 = smov [#allocation3]  }
   0x5   :  { %s35_s16 = sshll.u32 %s1285_s15, 4  ;;  %s25_s18 = sshll.u32 %s1286_s17, 4  ;;  %s36_s16 = int_to_ptr.vmem [resolvable:$true] %s35_s16  ;;  %s26_s18 = int_to_ptr.vmem [resolvable:$true] %s25_s18 }
   0x6   :  { %s1215_s21 = scalar_lea.hbm %s1564_s1, 128 }
   0x7   :  { %p1216_p0 = scmp.ne.s32.totalorder %s1564_s1, %s1215_s21  ;;  %p1219_p1 = scmp.lt.u32.totalorder %s1215_s21, %s1564_s1 }
   0x9   :  { %p1221_p2 = pnand %p1219_p1, %p1216_p0 }
   0xb   :  { %1224 = shalt.err (!%p1221_p2)
}
   0xc   :  { %s1225_s9 = scalar_lea.vmem %s36_s16, 128  ;;  %p1230_p4 = scmp.lt.s32.totalorder %s36_s16, %s36_s16 }
   0xd   :  { %p1226_p3 = scmp.ne.s32.totalorder %s36_s16, %s1225_s9  ;;  %p1231_p5 = scmp.lt.s32.totalorder %s1225_s9, %s1225_s9 }
   0xf   :  { %p1232_p6 = por %p1231_p5, %p1230_p4 }
  0x11   :  { %p1233_p7 = pnand %p1232_p6, %p1226_p3 }
  0x13   :  { %1236 = shalt.err (!%p1233_p7)
}
  0x14   :  { %38 = dma.hbm_to_vmem [thread:$0]  %s1564_s1, 128, %s36_s16, [#allocation6]  }
  0x15   :  { %s1237_s30 = scalar_lea.hbm %s1563_s0, 128 }
  0x16   :  { %p1238_p8 = scmp.ne.s32.totalorder %s1563_s0, %s1237_s30  ;;  %p1241_p9 = scmp.lt.u32.totalorder %s1237_s30, %s1563_s0 }
  0x18   :  { %p1243_p10 = pnand %p1241_p9, %p1238_p8 }
  0x1a   :  { %1246 = shalt.err (!%p1243_p10)
}
  0x1b   :  { %s1247_s15 = scalar_lea.vmem %s26_s18, 128  ;;  %p1252_p12 = scmp.lt.s32.totalorder %s26_s18, %s26_s18 }
  0x1c   :  { %p1248_p11 = scmp.ne.s32.totalorder %s26_s18, %s1247_s15  ;;  %p1253_p13 = scmp.lt.s32.totalorder %s1247_s15, %s1247_s15 }
  0x1e   :  { %p1254_p0 = por %p1253_p13, %p1252_p12 }
  0x20   :  { %p1255_p1 = pnand %p1254_p0, %p1248_p11 }
  0x22   :  { %1258 = shalt.err (!%p1255_p1)
}
  0x23   :  { %28 = dma.hbm_to_vmem [thread:$0]  %s1563_s0, 128, %s26_s18, [#allocation4]  }
  0x24   :  { %s1287_s17 = smov [#allocation7]   ;;  %s1259_s22 = scalar_lea.hbm %s1566_s3, 512 }
  0x25   :  { %s46_s19 = sshll.u32 %s1287_s17, 4  ;;  %p1260_p2 = scmp.ne.s32.totalorder %s1566_s3, %s1259_s22  ;;  %s47_s19 = int_to_ptr.vmem [resolvable:$true] %s46_s19 }
  0x26   :  { %p1263_p3 = scmp.lt.u32.totalorder %s1259_s22, %s1566_s3 }
  0x28   :  { %p1265_p4 = pnand %p1263_p3, %p1260_p2 }
  0x2a   :  { %1268 = shalt.err (!%p1265_p4)
}
  0x2b   :  { %s1269_s26 = scalar_lea.vmem %s47_s19, 512  ;;  %p1274_p6 = scmp.lt.s32.totalorder %s47_s19, %s47_s19 }
  0x2c   :  { %p1270_p5 = scmp.ne.s32.totalorder %s47_s19, %s1269_s26  ;;  %p1275_p7 = scmp.lt.s32.totalorder %s1269_s26, %s1269_s26 }
  0x2e   :  { %p1276_p8 = por %p1275_p7, %p1274_p6 }
  0x30   :  { %p1277_p9 = pnand %p1276_p8, %p1270_p5 }
  0x32   :  { %1280 = shalt.err (!%p1277_p9)
}
  0x33   :  { %s1288_s0 = smov 128   ;;  %s1289_s18 = smov 8  }
  0x34   :  { %52 = dma.hbm_to_vmem [thread:$0]  %s1566_s3, 512, %s47_s19, [#allocation6], %s1288_s0, %s1288_s0, %s1289_s18  }
  0x35   :  { %1281 = dma.done.wait [#allocation4], 128  }
  0x36   :  { %1282 = vsyncadd [#allocation4], 4294967168 }
  0x37   :  { %1283 = dma.done.wait [#allocation6], 640  }
  0x38   :  { %1284 = vsyncadd [#allocation6], 4294966656  ;;  %v1290_v1 = vmov 0.0|0.0   ;;  %vm1291_vm0 = vmmov 0   ;;  %v1292_v2 = vmov 0.0   ;;  %v1293_v3 = vmov 0  }
  0x39   :  { %1107 = vmatprep.subr.bf16.mxu0 %v1290_v1  ;;  %1027 = vmatprep.mubr.msk.f32.mxu0 %vm1291_vm0, %v1292_v2  ;;  %v74_v4 = vld [vmem:[#allocation7] sm:$0xff]  ;;  %v75_v5 = vld [vmem:[#allocation7 + $0x8] sm:$0xff]  ;;  %v76_v6 = vld [vmem:[#allocation7 + $0x10] sm:$0xff]  ;;  %s1294_s30 = smov 32   ;;  %vm104_vm1 = vcmask 261120   ;;  %v1295_v33 = vmov 1  }
  0x3a   :  { %1173 = vset.pattern.permute.xlu0 %v1293_v3  ;;  %1113 = vmatprep.subr.bf16.mxu1 %v1290_v1  ;;  %v1403_v7 = vpack.c.bf16 %v75_v5, %v74_v4  ;;  %v77_v8 = vld [vmem:[#allocation7 + $0x18] sm:$0xff]  ;;  %v1405_v9 = vld [vmem:[#allocation3] sm:$0xff]  ;;  %v1432_v14 = vld [vmem:[%s1567_s4] ss:$0 sm:$0xff]  ;;  %v1297_v52 = vmov 2   ;;  %vm957_vm2 = vcmask 7168  }
  0x3b   :  { %1038 = vmatprep.mubr.msk.f32.mxu1 %vm1291_vm0, %v1292_v2  ;;  %87 = vperm.xlu0 %1173, %v1405_v9   ;;  %v83_v10 = vld [vmem:[%s1565_s2] sm:$0xff]  ;;  %v1412_v11 = vpack.c.bf16 %v77_v8, %v76_v6  ;;  %v82_v12 = vld [vmem:[#allocation5] sm:$0xff] }
  0x3c   :  { %1109 = vmatpush3.bf16.msra.mxu0 %v1403_v7  ;;  %195 = vrot.lane.b32.xlu1 %v83_v10, %s1294_s30  ;;  %v1438_v16 = vld [vmem:[%s1568_s5] ss:$0 sm:$0xff]  ;;  %s1296_s5 = smov 64  }
  0x3d   :  { %1110 = vmatprep.subr.bf16.mxu0 %v1290_v1  ;;  %1115 = vmatpush3.bf16.msra.mxu1 %v1403_v7  ;;  %v1444_v21 = vld [vmem:[%s1569_s6] ss:$0 sm:$0xff] }
  0x3e   :  { %1116 = vmatprep.subr.bf16.mxu1 %v1290_v1  ;;  %v1449_v23 = vld [vmem:[%s1570_s7] ss:$0 sm:$0xff] }
  0x3f   :  { %1174 = vset.pattern.permute.xlu0 %v1295_v33 }
  0x40   :  { %1112 = vmatpush3.bf16.msra.mxu0 %v1412_v11 }
  0x41   :  { %1118 = vmatpush3.bf16.msra.mxu1 %v1412_v11  ;;  %1119 = vmatprep.subr.bf16.mxu0 %v1290_v1 }
  0x42   :  { %1125 = vmatprep.subr.bf16.mxu1 %v1290_v1 }
  0x43   :  { %1028 = vmatmul.mubr.msk.f32.vlgmr.msra.gmra.mrb[0].mxu0 %vm104_vm1, %v82_v12  ;;  %v1298_v12 = vmov 3  }
  0x44   :  { %1121 = vmatpush3.bf16.msra.mxu0 %v1403_v7  ;;  %1049 = vmatprep.mubr.msk.f32.mxu0 %vm1291_vm0, %v1292_v2 }
  0x45   :  { %1122 = vmatprep.subr.bf16.mxu0 %v1290_v1 }
  0x48   :  { %1124 = vmatpush3.bf16.msra.mxu0 %v1412_v11 }
  0x49   :  { %1131 = vmatprep.subr.bf16.mxu0 %v1290_v1 }
  0xae   :  { %v196_v28 = vpop.permute.xlu1 %195 }
  0xba   :  { %v88_v13 = vpop.permute.xlu0 %87 }
  0xbb   :  { %v96_v15 = vmul.f32 %v1432_v14, %v88_v13 }
  0xbd   :  { %v103_v17 = vadd.f32 %v1438_v16, %v96_v15 }
 0x116   :  { %v174_v18 = vpop.f32.mrb[0].mxu0 }
 0x117   :  { %v178_v19 = vadd.f32 %v174_v18, %v103_v17  ;;  %v1029_v20 = vpop.f32.mrb[1].mxu0 }
 0x119   :  { %1181 = vtanh.f32 %v178_v19 }
 0x123   :  { %v1182_v22 = vpop.eup %1181 }
 0x124   :  { %v186_v24 = vmul.f32 %v1182_v22, %v1444_v21 }
 0x126   :  { %v193_v25 = vadd.f32 %v1449_v23, %v186_v24 }
 0x128   :  { %200 = vrot.lane.b32.xlu0 %v193_v25, %s1294_s30  ;;  %v198_v29 = vmul.f32 %v196_v28, %v193_v25 }
 0x19a   :  { %v201_v26 = vpop.permute.xlu0 %200 }
 0x19b   :  { %v203_v27 = vmul.f32 %v201_v26, %v193_v25 }
 0x19d   :  { %205 = vrot.lane.b32.xlu1 %v203_v27, %s1294_s30 }
 0x20f   :  { %v206_v30 = vpop.permute.xlu1 %205 }
 0x210   :  { %v208_v31 = vadd.f32 %v206_v30, %v198_v29 }
 0x212   :  { %1183 = vtanh.f32 %v208_v31 }
 0x21c   :  { %v1184_v32 = vpop.eup %1183 }
 0x21d   :  { %211 = vrot.lane.b32.xlu0 %v1184_v32, %s1294_s30 }
 0x221   :  { %216 = vperm.xlu0 %1174, %v1405_v9  }
 0x225   :  { %1175 = vset.pattern.permute.xlu0 %v1297_v52 }
 0x28f   :  { %v212_v34 = vpop.permute.xlu0 %211 }
 0x290   :  { %v214_v35 = vmul.f32 %v212_v34, %v193_v25 }
 0x292   :  { %222 = vrot.lane.b32.xlu1 %v214_v35, %s1296_s5  ;;  %v1299_v35 = vmov 4  }
 0x2a0   :  { %v217_v37 = vpop.permute.xlu0 %216 }
 0x2a1   :  { %v219_v38 = vmul.f32 %v1432_v14, %v217_v37 }
 0x2a3   :  { %v220_v39 = vadd.f32 %v1438_v16, %v219_v38 }
 0x304   :  { %v223_v36 = vpop.permute.xlu1 %222 }
 0x305   :  { %1039 = vmatmul.mubr.msk.f32.vlgmr.msra.gmra.mrb[0].mxu1 %vm104_vm1, %v223_v36 }
 0x306   :  { %1127 = vmatpush3.bf16.msra.mxu1 %v1403_v7  ;;  %1060 = vmatprep.mubr.msk.f32.mxu1 %vm1291_vm0, %v1292_v2 }
 0x307   :  { %1128 = vmatprep.subr.bf16.mxu1 %v1290_v1 }
 0x30a   :  { %1130 = vmatpush3.bf16.msra.mxu1 %v1412_v11 }
 0x30b   :  { %1137 = vmatprep.subr.bf16.mxu1 %v1290_v1 }
 0x3d8   :  { %v292_v40 = vpop.f32.mrb[0].mxu1 }
 0x3d9   :  { %v296_v41 = vadd.f32 %v292_v40, %v220_v39  ;;  %v1040_v42 = vpop.f32.mrb[1].mxu1 }
 0x3db   :  { %1185 = vtanh.f32 %v296_v41 }
 0x3e5   :  { %v1186_v43 = vpop.eup %1185 }
 0x3e6   :  { %v298_v44 = vmul.f32 %v1186_v43, %v1444_v21 }
 0x3e8   :  { %v299_v45 = vadd.f32 %v1449_v23, %v298_v44 }
 0x3ea   :  { %302 = vrot.lane.b32.xlu1 %v299_v45, %s1294_s30  ;;  %v300_v48 = vmul.f32 %v299_v45, %v208_v31 }
 0x45c   :  { %v303_v46 = vpop.permute.xlu1 %302 }
 0x45d   :  { %v305_v47 = vmul.f32 %v303_v46, %v299_v45 }
 0x45f   :  { %307 = vrot.lane.b32.xlu1 %v305_v47, %s1294_s30 }
 0x4d1   :  { %v308_v49 = vpop.permute.xlu1 %307 }
 0x4d2   :  { %v310_v50 = vadd.f32 %v308_v49, %v300_v48 }
 0x4d4   :  { %1187 = vtanh.f32 %v310_v50 }
 0x4de   :  { %v1188_v51 = vpop.eup %1187 }
 0x4df   :  { %313 = vrot.lane.b32.xlu0 %v1188_v51, %s1294_s30 }
 0x4e3   :  { %318 = vperm.xlu0 %1175, %v1405_v9  }
 0x4e7   :  { %1176 = vset.pattern.permute.xlu0 %v1298_v12 }
 0x551   :  { %v314_v53 = vpop.permute.xlu0 %313 }
 0x552   :  { %v316_v54 = vmul.f32 %v314_v53, %v299_v45 }
 0x554   :  { %324 = vrot.lane.b32.xlu1 %v316_v54, %s1296_s5  ;;  %v1300_v54 = vmov 5  }
 0x562   :  { %v319_v56 = vpop.permute.xlu0 %318 }
 0x563   :  { %v321_v57 = vmul.f32 %v1432_v14, %v319_v56 }
 0x565   :  { %v322_v58 = vadd.f32 %v1438_v16, %v321_v57 }
 0x5c6   :  { %v325_v55 = vpop.permute.xlu1 %324 }
 0x5c7   :  { %1050 = vmatmul.mubr.msk.f32.vlgmr.msra.gmra.mrb[2].mxu0 %vm104_vm1, %v325_v55 }
 0x5c8   :  { %1133 = vmatpush3.bf16.msra.mxu0 %v1403_v7  ;;  %1071 = vmatprep.mubr.msk.f32.mxu0 %vm1291_vm0, %v1292_v2 }
 0x5c9   :  { %1134 = vmatprep.subr.bf16.mxu0 %v1290_v1 }
 0x5cc   :  { %1136 = vmatpush3.bf16.msra.mxu0 %v1412_v11 }
 0x5cd   :  { %1143 = vmatprep.subr.bf16.mxu0 %v1290_v1 }
 0x69a   :  { %v394_v59 = vpop.f32.mrb[2].mxu0 }
 0x69b   :  { %v398_v60 = vadd.f32 %v394_v59, %v322_v58  ;;  %v1051_v61 = vpop.f32.mrb[3].mxu0 }
 0x69d   :  { %1189 = vtanh.f32 %v398_v60 }
 0x6a7   :  { %v1190_v62 = vpop.eup %1189 }
 0x6a8   :  { %v400_v63 = vmul.f32 %v1190_v62, %v1444_v21 }
 0x6aa   :  { %v401_v0 = vadd.f32 %v1449_v23, %v400_v63 }
 0x6ac   :  { %404 = vrot.lane.b32.xlu1 %v401_v0, %s1294_s30  ;;  %v402_v5 = vmul.f32 %v401_v0, %v310_v50 }
 0x71e   :  { %v405_v3 = vpop.permute.xlu1 %404 }
 0x71f   :  { %v407_v4 = vmul.f32 %v405_v3, %v401_v0 }
 0x721   :  { %409 = vrot.lane.b32.xlu1 %v407_v4, %s1294_s30 }
 0x793   :  { %v410_v6 = vpop.permute.xlu1 %409 }
 0x794   :  { %v412_v8 = vadd.f32 %v410_v6, %v402_v5 }
 0x796   :  { %1191 = vtanh.f32 %v412_v8 }
 0x7a0   :  { %v1192_v10 = vpop.eup %1191 }
 0x7a1   :  { %415 = vrot.lane.b32.xlu0 %v1192_v10, %s1294_s30 }
 0x7a5   :  { %420 = vperm.xlu0 %1176, %v1405_v9  }
 0x7a9   :  { %1177 = vset.pattern.permute.xlu0 %v1299_v35 }
 0x813   :  { %v416_v13 = vpop.permute.xlu0 %415 }
 0x814   :  { %v418_v15 = vmul.f32 %v416_v13, %v401_v0 }
 0x816   :  { %426 = vrot.lane.b32.xlu1 %v418_v15, %s1296_s5 }
 0x824   :  { %v421_v18 = vpop.permute.xlu0 %420 }
 0x825   :  { %v423_v19 = vmul.f32 %v1432_v14, %v421_v18 }
 0x827   :  { %v424_v20 = vadd.f32 %v1438_v16, %v423_v19 }
 0x888   :  { %v427_v17 = vpop.permute.xlu1 %426 }
 0x889   :  { %1061 = vmatmul.mubr.msk.f32.vlgmr.msra.gmra.mrb[2].mxu1 %vm104_vm1, %v427_v17 }
 0x88a   :  { %1139 = vmatpush3.bf16.msra.mxu1 %v1403_v7  ;;  %1082 = vmatprep.mubr.msk.f32.mxu1 %vm1291_vm0, %v1292_v2 }
 0x88b   :  { %1140 = vmatprep.subr.bf16.mxu1 %v1290_v1 }
 0x88e   :  { %1142 = vmatpush3.bf16.msra.mxu1 %v1412_v11 }
 0x88f   :  { %1149 = vmatprep.subr.bf16.mxu1 %v1290_v1 }
 0x95c   :  { %v496_v22 = vpop.f32.mrb[2].mxu1 }
 0x95d   :  { %v500_v24 = vadd.f32 %v496_v22, %v424_v20  ;;  %v1062_v25 = vpop.f32.mrb[3].mxu1 }
 0x95f   :  { %1193 = vtanh.f32 %v500_v24 }
 0x969   :  { %v1194_v26 = vpop.eup %1193 }
 0x96a   :  { %v502_v27 = vmul.f32 %v1194_v26, %v1444_v21 }
 0x96c   :  { %v503_v28 = vadd.f32 %v1449_v23, %v502_v27 }
 0x96e   :  { %506 = vrot.lane.b32.xlu1 %v503_v28, %s1294_s30  ;;  %v504_v31 = vmul.f32 %v503_v28, %v412_v8  ;;  %v1301_v8 = vmov 6  }
 0x9e0   :  { %v507_v29 = vpop.permute.xlu1 %506 }
 0x9e1   :  { %v509_v30 = vmul.f32 %v507_v29, %v503_v28 }
 0x9e3   :  { %511 = vrot.lane.b32.xlu1 %v509_v30, %s1294_s30 }
 0xa55   :  { %v512_v32 = vpop.permute.xlu1 %511 }
 0xa56   :  { %v514_v33 = vadd.f32 %v512_v32, %v504_v31 }
 0xa58   :  { %1195 = vtanh.f32 %v514_v33 }
 0xa62   :  { %v1196_v34 = vpop.eup %1195 }
 0xa63   :  { %517 = vrot.lane.b32.xlu0 %v1196_v34, %s1294_s30 }
 0xa67   :  { %522 = vperm.xlu0 %1177, %v1405_v9  }
 0xa6b   :  { %1178 = vset.pattern.permute.xlu0 %v1300_v54  ;;  %v978_v54 = vld [vmem:[#allocation2] ss:$0 sm:$0xff] }
 0xad5   :  { %v518_v36 = vpop.permute.xlu0 %517 }
 0xad6   :  { %v520_v37 = vmul.f32 %v518_v36, %v503_v28 }
 0xad8   :  { %528 = vrot.lane.b32.xlu1 %v520_v37, %s1296_s5 }
 0xae6   :  { %v523_v39 = vpop.permute.xlu0 %522 }
 0xae7   :  { %v525_v40 = vmul.f32 %v1432_v14, %v523_v39 }
 0xae9   :  { %v526_v41 = vadd.f32 %v1438_v16, %v525_v40 }
 0xb4a   :  { %v529_v38 = vpop.permute.xlu1 %528 }
 0xb4b   :  { %1072 = vmatmul.mubr.msk.f32.vlgmr.msra.gmra.mrb[4].mxu0 %vm104_vm1, %v529_v38 }
 0xb4c   :  { %1145 = vmatpush3.bf16.msra.mxu0 %v1403_v7  ;;  %1093 = vmatprep.mubr.msk.f32.mxu0 %vm1291_vm0, %v1292_v2 }
 0xb4d   :  { %1146 = vmatprep.subr.bf16.mxu0 %v1290_v1 }
 0xb50   :  { %1148 = vmatpush3.bf16.msra.mxu0 %v1412_v11 }
 0xc1e   :  { %v598_v42 = vpop.f32.mrb[4].mxu0 }
 0xc1f   :  { %v602_v43 = vadd.f32 %v598_v42, %v526_v41  ;;  %v1073_v44 = vpop.f32.mrb[5].mxu0 }
 0xc21   :  { %1197 = vtanh.f32 %v602_v43 }
 0xc2b   :  { %v1198_v45 = vpop.eup %1197 }
 0xc2c   :  { %v604_v46 = vmul.f32 %v1198_v45, %v1444_v21 }
 0xc2e   :  { %v605_v47 = vadd.f32 %v1449_v23, %v604_v46 }
 0xc30   :  { %608 = vrot.lane.b32.xlu1 %v605_v47, %s1294_s30  ;;  %v606_v50 = vmul.f32 %v605_v47, %v514_v33  ;;  %v1302_v33 = vmov 7  }
 0xca2   :  { %v609_v48 = vpop.permute.xlu1 %608 }
 0xca3   :  { %v611_v49 = vmul.f32 %v609_v48, %v605_v47 }
 0xca5   :  { %613 = vrot.lane.b32.xlu1 %v611_v49, %s1294_s30 }
 0xd17   :  { %v614_v51 = vpop.permute.xlu1 %613 }
 0xd18   :  { %v616_v52 = vadd.f32 %v614_v51, %v606_v50 }
 0xd1a   :  { %1199 = vtanh.f32 %v616_v52 }
 0xd24   :  { %v1200_v53 = vpop.eup %1199 }
 0xd25   :  { %619 = vrot.lane.b32.xlu0 %v1200_v53, %s1294_s30 }
 0xd29   :  { %624 = vperm.xlu0 %1178, %v1405_v9  }
 0xd2d   :  { %1179 = vset.pattern.permute.xlu0 %v1301_v8 }
 0xd97   :  { %v620_v55 = vpop.permute.xlu0 %619 }
 0xd98   :  { %v622_v56 = vmul.f32 %v620_v55, %v605_v47 }
 0xd9a   :  { %630 = vrot.lane.b32.xlu1 %v622_v56, %s1296_s5 }
 0xda8   :  { %v625_v58 = vpop.permute.xlu0 %624 }
 0xda9   :  { %v627_v59 = vmul.f32 %v1432_v14, %v625_v58 }
 0xdab   :  { %v628_v60 = vadd.f32 %v1438_v16, %v627_v59 }
 0xe0c   :  { %v631_v57 = vpop.permute.xlu1 %630 }
 0xe0d   :  { %1083 = vmatmul.mubr.msk.f32.vlgmr.msra.gmra.mrb[4].mxu1 %vm104_vm1, %v631_v57 }
 0xe0e   :  { %1151 = vmatpush3.bf16.msra.mxu1 %v1403_v7  ;;  %1104 = vmatprep.mubr.msk.f32.mxu1 %vm1291_vm0, %v1292_v2 }
 0xe0f   :  { %1152 = vmatprep.subr.bf16.mxu1 %v1290_v1 }
 0xe12   :  { %1154 = vmatpush3.bf16.msra.mxu1 %v1412_v11 }
 0xee0   :  { %v700_v61 = vpop.f32.mrb[4].mxu1 }
 0xee1   :  { %v704_v62 = vadd.f32 %v700_v61, %v628_v60  ;;  %v1084_v63 = vpop.f32.mrb[5].mxu1 }
 0xee3   :  { %1201 = vtanh.f32 %v704_v62 }
 0xeed   :  { %v1202_v0 = vpop.eup %1201 }
 0xeee   :  { %v706_v3 = vmul.f32 %v1202_v0, %v1444_v21 }
 0xef0   :  { %v707_v7 = vadd.f32 %v1449_v23, %v706_v3 }
 0xef2   :  { %710 = vrot.lane.b32.xlu1 %v707_v7, %s1294_s30  ;;  %v708_v11 = vmul.f32 %v707_v7, %v616_v52 }
 0xf64   :  { %v711_v2 = vpop.permute.xlu1 %710 }
 0xf65   :  { %v713_v1 = vmul.f32 %v711_v2, %v707_v7 }
 0xf67   :  { %715 = vrot.lane.b32.xlu1 %v713_v1, %s1294_s30 }
 0xfd9   :  { %v716_v4 = vpop.permute.xlu1 %715 }
 0xfda   :  { %v718_v5 = vadd.f32 %v716_v4, %v708_v11 }
 0xfdc   :  { %1203 = vtanh.f32 %v718_v5 }
 0xfe6   :  { %v1204_v6 = vpop.eup %1203 }
 0xfe7   :  { %721 = vrot.lane.b32.xlu0 %v1204_v6, %s1294_s30 }
 0xfeb   :  { %726 = vperm.xlu0 %1179, %v1405_v9  }
 0xfef   :  { %1180 = vset.pattern.permute.xlu0 %v1302_v33 }
0x1059   :  { %v722_v10 = vpop.permute.xlu0 %721 }
0x105a   :  { %v724_v12 = vmul.f32 %v722_v10, %v707_v7 }
0x105c   :  { %732 = vrot.lane.b32.xlu1 %v724_v12, %s1296_s5 }
0x106a   :  { %v727_v15 = vpop.permute.xlu0 %726 }
0x106b   :  { %v729_v17 = vmul.f32 %v1432_v14, %v727_v15 }
0x106d   :  { %v730_v18 = vadd.f32 %v1438_v16, %v729_v17 }
0x10ce   :  { %v733_v13 = vpop.permute.xlu1 %732 }
0x10cf   :  { %1094 = vmatmul.mubr.msk.f32.vlgmr.msra.gmra.mrb[6].mxu0 %vm104_vm1, %v733_v13 }
0x11a2   :  { %v802_v19 = vpop.f32.mrb[6].mxu0 }
0x11a3   :  { %v806_v20 = vadd.f32 %v802_v19, %v730_v18  ;;  %v1095_v22 = vpop.f32.mrb[7].mxu0 }
0x11a5   :  { %1205 = vtanh.f32 %v806_v20 }
0x11af   :  { %v1206_v24 = vpop.eup %1205 }
0x11b0   :  { %v808_v25 = vmul.f32 %v1206_v24, %v1444_v21 }
0x11b2   :  { %v809_v26 = vadd.f32 %v1449_v23, %v808_v25 }
0x11b4   :  { %812 = vrot.lane.b32.xlu1 %v809_v26, %s1294_s30  ;;  %v810_v29 = vmul.f32 %v809_v26, %v718_v5 }
0x1226   :  { %v813_v27 = vpop.permute.xlu1 %812 }
0x1227   :  { %v815_v28 = vmul.f32 %v813_v27, %v809_v26 }
0x1229   :  { %817 = vrot.lane.b32.xlu1 %v815_v28, %s1294_s30 }
0x129b   :  { %v818_v30 = vpop.permute.xlu1 %817 }
0x129c   :  { %v820_v31 = vadd.f32 %v818_v30, %v810_v29 }
0x129e   :  { %1207 = vtanh.f32 %v820_v31 }
0x12a8   :  { %v1208_v32 = vpop.eup %1207 }
0x12a9   :  { %823 = vrot.lane.b32.xlu0 %v1208_v32, %s1294_s30 }
0x12ad   :  { %828 = vperm.xlu0 %1180, %v1405_v9  }
0x131b   :  { %v824_v34 = vpop.permute.xlu0 %823 }
0x131c   :  { %v826_v35 = vmul.f32 %v824_v34, %v809_v26 }
0x131e   :  { %834 = vrot.lane.b32.xlu1 %v826_v35, %s1296_s5 }
0x132c   :  { %v829_v37 = vpop.permute.xlu0 %828 }
0x132d   :  { %v831_v38 = vmul.f32 %v1432_v14, %v829_v37  ;;  %v977_v14 = vld [vmem:[%s1571_s8] ss:$0 sm:$0xff] }
0x132f   :  { %v832_v39 = vadd.f32 %v1438_v16, %v831_v38 }
0x1390   :  { %v835_v36 = vpop.permute.xlu1 %834 }
0x1391   :  { %1105 = vmatmul.mubr.msk.f32.vlgmr.msra.gmra.mrb[6].mxu1 %vm104_vm1, %v835_v36 }
0x1464   :  { %v904_v40 = vpop.f32.mrb[6].mxu1 }
0x1465   :  { %v908_v41 = vadd.f32 %v904_v40, %v832_v39  ;;  %v1106_v42 = vpop.f32.mrb[7].mxu1 }
0x1467   :  { %1209 = vtanh.f32 %v908_v41 }
0x1471   :  { %v1210_v43 = vpop.eup %1209 }
0x1472   :  { %v910_v44 = vmul.f32 %v1210_v43, %v1444_v21 }
0x1474   :  { %v911_v9 = vadd.f32 %v1449_v23, %v910_v44 }
0x1476   :  { %914 = vrot.lane.b32.xlu1 %v911_v9, %s1294_s30  ;;  %v912_v16 = vmul.f32 %v911_v9, %v820_v31 }
0x14e8   :  { %v915_v45 = vpop.permute.xlu1 %914 }
0x14e9   :  { %v917_v46 = vmul.f32 %v915_v45, %v911_v9 }
0x14eb   :  { %919 = vrot.lane.b32.xlu1 %v917_v46, %s1294_s30 }
0x14ef   :  { %935 = vrot.lane.b32.xlu1 %v977_v14, %s1296_s5 }
0x155d   :  { %v920_v47 = vpop.permute.xlu1 %919 }
0x155e   :  { %v922_v48 = vadd.f32 %v920_v47, %v912_v16 }
0x1560   :  { %1211 = vtanh.f32 %v922_v48 }
0x1561   :  { %v936_v23 = vpop.permute.xlu1 %935 }
0x156a   :  { %v1212_v49 = vpop.eup %1211 }
0x156b   :  { %925 = vrot.lane.b32.xlu0 %v1212_v49, %s1294_s30 }
0x15dd   :  { %v926_v21 = vpop.permute.xlu0 %925 }
0x15de   :  { %v928_v50 = vmul.f32 %v926_v21, %v911_v9 }
0x15e0   :  { %v938_v51 = vmul.f32 %v936_v23, %v928_v50 }
0x15e2   :  { %940 = vrot.lane.b32.xlu0 %v938_v51, %s1296_s5 }
0x1654   :  { %v941_v52 = vpop.permute.xlu0 %940 }
0x1655   :  { %v943_v53 = vsel %vm104_vm1, %v941_v52, 0.0 }
0x1656   :  { %944 = vadd.xlane.f32.xlu1 %v943_v53 }
0x16e3   :  { %v945_v55 = vpop.xlane.xlu1 %944 }
0x16e4   :  { %v953_v56 = vadd.f32 %v978_v54, %v945_v55 }
0x16e6   :  { %1213 = vtanh.f32 %v953_v56 }
0x16f0   :  { %v1214_v57 = vpop.eup %1213 }
0x16f1   :  { %v955_v58 = vmul.f32 0.5, %v1214_v57 }
0x16f3   :  { %v956_v59 = vadd.f32 0.5, %v955_v58 }
0x16f5   :  { %958 = vst.msk [vmem:[%s1573_s10] sm:$0xff] %vm957_vm2, %v956_v59 }
0x16f6   :  { %963 = vsyncpa [#allocation4], 1 }
0x16f7   :  { %964 = vsyncpa [#allocation6], 1 }

</bundles_post_ra>
